<compile_context>
chip_gen: v5e
topology: v5e:2x2
jax: 0.10.0
libtpu: 0.0.40
codegen_flags: <defaults>
</compile_context>

<pallas_src>
import functools

import jax
import jax.numpy as jnp
from jax.experimental import pallas as pl
from jax.experimental.pallas import tpu as pltpu

LN_EPS = 1e-5  # PyTorch nn.LayerNorm default


# ----------------------------------------------------------------------------
# Kernels
# ----------------------------------------------------------------------------
def _layer_norm(y, gamma, beta):
    """fp32 LayerNorm over the last (d_model) dim."""
    mean = jnp.mean(y, axis=-1, keepdims=True)
    centered = y - mean
    var = jnp.mean(centered * centered, axis=-1, keepdims=True)
    return centered * jax.lax.rsqrt(var + LN_EPS) * gamma + beta


def ffn_fused_kernel(x_ref, w1_ref, b1_ref, w2_ref, b2_ref, g_ref, beta_ref,
                     o_ref):
    """Whole d_ff resident: two MXU matmuls + ReLU + residual + LayerNorm."""
    x_f32 = x_ref[...].astype(jnp.float32)

    h = jnp.dot(x_ref[...].astype(w1_ref.dtype), w1_ref[...],
                preferred_element_type=jnp.float32) + b1_ref[...]
    h = jnp.maximum(h, 0.0)

    y = jnp.dot(h.astype(w2_ref.dtype), w2_ref[...],
                preferred_element_type=jnp.float32) + b2_ref[...] + x_f32

    o_ref[...] = _layer_norm(y, g_ref[...], beta_ref[...]).astype(o_ref.dtype)


def ffn_stream_kernel(x_ref, w1_ref, b1_ref, w2_ref, b2_ref, g_ref, beta_ref,
                      o_ref, acc_ref):
    """d_ff streamed in blocks along grid axis 1; fp32 accumulator scratch."""
    k = pl.program_id(1)

    @pl.when(k == 0)
    def _():
        acc_ref[...] = x_ref[...].astype(jnp.float32) + b2_ref[...]

    h = jnp.dot(x_ref[...].astype(w1_ref.dtype), w1_ref[...],
                preferred_element_type=jnp.float32) + b1_ref[...]
    h = jnp.maximum(h, 0.0)
    acc_ref[...] += jnp.dot(h.astype(w2_ref.dtype), w2_ref[...],
                            preferred_element_type=jnp.float32)

    @pl.when(k == pl.num_programs(1) - 1)
    def _():
        o_ref[...] = _layer_norm(acc_ref[...], g_ref[...],
                                 beta_ref[...]).astype(o_ref.dtype)


# ----------------------------------------------------------------------------
# Wrapper
# ----------------------------------------------------------------------------
def _round_up(n, m):
    return ((n + m - 1) // m) * m


def _vmem_budget_bytes():
    """~3/4 of physical VMEM (≈96 MiB on v5e/v6e, ≈48 MiB on v7x)."""
    cap = None
    try:
        cap = int(getattr(pltpu.get_tpu_info(), "vmem_capacity_bytes", 0)) or None
    except Exception:
        cap = None
    if not cap:
        cap = 64 << 20  # conservative fallback (v7x per-TC VMEM)
    return (cap * 3) // 4


def _choose_tile_rows(rows, tile_rows):
    tr = max(8, min(_round_up(tile_rows, 8), _round_up(rows, 8)))
    # >=2 row steps (when possible) so both v7x TensorCores get work on the
    # "parallel" row axis.
    if rows > 8 and pl.cdiv(rows, tr) < 2:
        tr = _round_up(pl.cdiv(rows, 2), 8)
    return tr


def _resident_spec(shape, index_map):
    """BlockSpec for a grid-invariant operand: single pipeline buffer."""
    try:
        return pl.BlockSpec(shape, index_map, pipeline_mode=pl.Buffered(1))
    except (TypeError, ValueError):  # older jax: fall back to default buffering
        return pl.BlockSpec(shape, index_map)


@functools.partial(jax.jit, static_argnames=("tile_rows", "matmul_dtype",
                                              "out_dtype", "dff_block"))
def pwffn_forward(x, w1, b1, w2, b2, gamma, beta, *, tile_rows=512,
                  matmul_dtype=jnp.bfloat16, out_dtype=None, dff_block=None):
    """BERT position-wise FFN: LayerNorm(ReLU(x@W1+b1)@W2+b2 + x).

    x: [B, S, d_model]; w1: [d_model, d_ff]; w2: [d_ff, d_model].
    Mixed precision: bf16 matmul operands, fp32 accumulation / residual / LN
    (expect ~1e-2 deviation vs a pure-fp32 reference).
    Keep d_model / d_ff multiples of 128 for production shapes (lane-dense
    stores, full MXU tiles). Set out_dtype=jnp.bfloat16 to halve writeback.
    dff_block: force streaming d_ff in blocks of this size (must divide d_ff);
    None -> auto (stream only if fully-resident weights exceed the VMEM budget).
    """
    B, S, D = x.shape
    Dff = w1.shape[1]
    rows = B * S
    out_dtype = x.dtype if out_dtype is None else out_dtype

    tile_rows = _choose_tile_rows(rows, tile_rows)
    grid_rows = pl.cdiv(rows, tile_rows)

    itemsize_x = jnp.dtype(x.dtype).itemsize
    itemsize_o = jnp.dtype(out_dtype).itemsize
    itemsize_w = jnp.dtype(matmul_dtype).itemsize
    budget = _vmem_budget_bytes()

    def footprint(kb):
        w_buffers = 1 if kb == Dff else 2          # streamed W blocks dbl-buffer
        return (
            2 * tile_rows * D * itemsize_x          # x tile, double-buffered
            + 2 * tile_rows * D * itemsize_o        # out tile, double-buffered
            + w_buffers * (D * kb + kb * D) * itemsize_w   # W1 + W2 blocks
            + 3 * tile_rows * kb * 4                # fp32 h intermediate + temps
            + 4 * tile_rows * D * 4                 # fp32 y/acc/LN temporaries
            + (2 * Dff + 6 * D) * 4                 # biases, gamma, beta
        )

    if dff_block is None:
        dff_block = Dff
        if footprint(Dff) > budget:
            for cand in (2048, 1024, 512, 256, 128):
                if cand < Dff and Dff % cand == 0:
                    dff_block = cand
                    break
            # TODO(synk): if d_ff has no 128-multiple divisor we stay fused;
            # ragged d_ff blocks would add garbage into the accumulator.
    if Dff % dff_block != 0:
        raise ValueError("dff_block must divide d_ff")

    vmem_needed = footprint(dff_block)
    vmem_limit = int(min(max(int(vmem_needed * 1.25) + (4 << 20), 16 << 20),
                         budget))

    # 2-D slab [rows, d_model]; reshape of a contiguous array is free.
    x2d = x.reshape(rows, D)
    w1c = w1.astype(matmul_dtype)
    w2c = w2.astype(matmul_dtype)
    b1_2d = b1.reshape(1, Dff).astype(jnp.float32)
    b2_2d = b2.reshape(1, D).astype(jnp.float32)
    g_2d = gamma.reshape(1, D).astype(jnp.float32)
    beta_2d = beta.reshape(1, D).astype(jnp.float32)

    cost = pl.CostEstimate(
        flops=4 * rows * D * Dff,                       # two matmuls
        transcendentals=rows,                           # rsqrt per row
        bytes_accessed=(rows * D * (itemsize_x + itemsize_o)
                        + 2 * D * Dff * itemsize_w
                        + (2 * Dff + 6 * D) * 4),
    )

    if dff_block == Dff:
        grid_spec = pltpu.PrefetchScalarGridSpec(
            num_scalar_prefetch=0,
            grid=(grid_rows,),
            in_specs=[
                pl.BlockSpec((tile_rows, D), lambda i: (i, 0)),     # x rows
                _resident_spec((D, Dff), lambda i: (0, 0)),          # W1
                _resident_spec((1, Dff), lambda i: (0, 0)),          # b1
                _resident_spec((Dff, D), lambda i: (0, 0)),          # W2
                _resident_spec((1, D), lambda i: (0, 0)),            # b2
                _resident_spec((1, D), lambda i: (0, 0)),            # gamma
                _resident_spec((1, D), lambda i: (0, 0)),            # beta
            ],
            out_specs=pl.BlockSpec((tile_rows, D), lambda i: (i, 0)),
        )
        kernel = ffn_fused_kernel
        dims = ("parallel",)
    else:
        kb = dff_block
        grid_spec = pltpu.PrefetchScalarGridSpec(
            num_scalar_prefetch=0,
            grid=(grid_rows, Dff // kb),
            in_specs=[
                pl.BlockSpec((tile_rows, D), lambda i, k: (i, 0)),   # x rows
                pl.BlockSpec((D, kb), lambda i, k: (0, k)),          # W1 cols
                pl.BlockSpec((1, kb), lambda i, k: (0, k)),          # b1 slice
                pl.BlockSpec((kb, D), lambda i, k: (k, 0)),          # W2 rows
                _resident_spec((1, D), lambda i, k: (0, 0)),         # b2
                _resident_spec((1, D), lambda i, k: (0, 0)),         # gamma
                _resident_spec((1, D), lambda i, k: (0, 0)),         # beta
            ],
            out_specs=pl.BlockSpec((tile_rows, D), lambda i, k: (i, 0)),
            scratch_shapes=[pltpu.VMEM((tile_rows, D), jnp.float32)],
        )
        kernel = ffn_stream_kernel
        dims = ("parallel", "arbitrary")

    out2d = pl.pallas_call(
        kernel,
        out_shape=jax.ShapeDtypeStruct((rows, D), out_dtype),
        grid_spec=grid_spec,
        compiler_params=pltpu.CompilerParams(
            dimension_semantics=dims,
            vmem_limit_bytes=vmem_limit,
        ),
        cost_estimate=cost,
    )(x2d, w1c, b1_2d, w2c, b2_2d, g_2d, beta_2d)

    return out2d.reshape(B, S, D)


# ----------------------------------------------------------------------------
# Reference + self-test
# ----------------------------------------------------------------------------
def reference_forward(x, w1, b1, w2, b2, gamma, beta):
    """Plain-JAX fp32 reference mirroring the PyTorch module."""
    h = jnp.maximum(jnp.einsum("bsd,df->bsf", x, w1) + b1, 0.0)
    y = jnp.einsum("bsf,fd->bsd", h, w2) + b2 + x
    mean = jnp.mean(y, axis=-1, keepdims=True)
    var = jnp.mean((y - mean) ** 2, axis=-1, keepdims=True)
    return (y - mean) / jnp.sqrt(var + LN_EPS) * gamma + beta


def _make_inputs(key, batch, seq_len, d_model, d_ff):
    kx, k1, k2, k3, k4, k5, k6 = jax.random.split(key, 7)
    x = jax.random.normal(kx, (batch, seq_len, d_model), dtype=jnp.float32)
    # torch Conv1d weight is [out, in, 1]; stored transposed as [in, out] so
    # the pointwise conv is x @ W.
    w1 = jax.random.normal(k1, (d_model, d_ff), dtype=jnp.float32) * 0.05
    b1 = jax.random.normal(k2, (d_ff,), dtype=jnp.float32) * 0.05
    w2 = jax.random.normal(k3, (d_ff, d_model), dtype=jnp.float32) * 0.05
    b2 = jax.random.normal(k4, (d_model,), dtype=jnp.float32) * 0.05
    gamma = 1.0 + 0.1 * jax.random.normal(k5, (d_model,), dtype=jnp.float32)
    beta = 0.1 * jax.random.normal(k6, (d_model,), dtype=jnp.float32)
    return x, w1, b1, w2, b2, gamma, beta


if __name__ == "__main__":
    key = jax.random.PRNGKey(0)
    k_a, k_b = jax.random.split(key)

    # 1) Fused path (small BERT-ish shapes).
    args = _make_inputs(k_a, batch=2, seq_len=8, d_model=32, d_ff=64)
    out = jax.block_until_ready(pwffn_forward(*args))
    ref = reference_forward(*args)
    assert out.shape == (2, 8, 32)
    assert jnp.allclose(out, ref, atol=2e-2, rtol=2e-2), "fused path mismatch"

    # 2) d_ff-streaming path (forced), exercising the accumulator / pl.when
    #    structure used on v7x when weights don't fit VMEM.
    args2 = _make_inputs(k_b, batch=2, seq_len=8, d_model=128, d_ff=256)
    out2 = jax.block_until_ready(pwffn_forward(*args2, dff_block=128))
    ref2 = reference_forward(*args2)
    assert out2.shape == (2, 8, 128)
    assert jnp.allclose(out2, ref2, atol=2e-2, rtol=2e-2), "stream path mismatch"

    print("KERNEL_OK")
</pallas_src>

<mosaic_0001>
module attributes {stable_mosaic.version = 11 : i64} {
  func.func @ffn_fused_kernel(%arg0: i32, %arg1: memref<8x32xf32, #tpu.memory_space<vmem>>, %arg2: memref<32x64xbf16, #tpu.memory_space<vmem>>, %arg3: memref<1x64xf32, #tpu.memory_space<vmem>>, %arg4: memref<64x32xbf16, #tpu.memory_space<vmem>>, %arg5: memref<1x32xf32, #tpu.memory_space<vmem>>, %arg6: memref<1x32xf32, #tpu.memory_space<vmem>>, %arg7: memref<1x32xf32, #tpu.memory_space<vmem>>, %arg8: memref<8x32xf32, #tpu.memory_space<vmem>>) attributes {dimension_semantics = [#tpu.dimension_semantics<parallel>], iteration_bounds = array<i64: 2>, scalar_prefetch = 0 : i64, scratch_operands = 0 : i64, tpu.core_type = #tpu.core_type<tc>, window_params = [{transform_indices = @transform_0, window_bounds = array<i64: 8, 32>}, {pipeline_mode = #tpu.pipeline_mode<synchronous>, transform_indices = @transform_1, window_bounds = array<i64: 32, 64>}, {pipeline_mode = #tpu.pipeline_mode<synchronous>, transform_indices = @transform_2, window_bounds = array<i64: 1, 64>}, {pipeline_mode = #tpu.pipeline_mode<synchronous>, transform_indices = @transform_3, window_bounds = array<i64: 64, 32>}, {pipeline_mode = #tpu.pipeline_mode<synchronous>, transform_indices = @transform_4, window_bounds = array<i64: 1, 32>}, {pipeline_mode = #tpu.pipeline_mode<synchronous>, transform_indices = @transform_5, window_bounds = array<i64: 1, 32>}, {pipeline_mode = #tpu.pipeline_mode<synchronous>, transform_indices = @transform_6, window_bounds = array<i64: 1, 32>}, {transform_indices = @transform_7, window_bounds = array<i64: 8, 32>}]} {
    %c0 = arith.constant 0 : index
    %c0_0 = arith.constant 0 : index
    %0 = vector.load %arg1[%c0, %c0_0] : memref<8x32xf32, #tpu.memory_space<vmem>>, vector<8x32xf32>
    %c0_1 = arith.constant 0 : index
    %c0_2 = arith.constant 0 : index
    %1 = vector.load %arg1[%c0_1, %c0_2] : memref<8x32xf32, #tpu.memory_space<vmem>>, vector<8x32xf32>
    %2 = arith.truncf %1 : vector<8x32xf32> to vector<8x32xbf16>
    %c0_3 = arith.constant 0 : index
    %c0_4 = arith.constant 0 : index
    %3 = vector.load %arg2[%c0_3, %c0_4] : memref<32x64xbf16, #tpu.memory_space<vmem>>, vector<32x64xbf16>
    %cst = arith.constant dense<0.000000e+00> : vector<8x64xf32>
    %4 = tpu.matmul %2, %3, %cst {dimension_numbers = #tpu.dot_dimension_numbers<[1], [0], [0], [1], [0, 0, 1, 1], [], []>} : vector<8x32xbf16>, vector<32x64xbf16>, vector<8x64xf32> -> vector<8x64xf32>
    %c0_5 = arith.constant 0 : index
    %c0_6 = arith.constant 0 : index
    %5 = vector.load %arg3[%c0_5, %c0_6] : memref<1x64xf32, #tpu.memory_space<vmem>>, vector<1x64xf32>
    %6 = vector.broadcast %5 : vector<1x64xf32> to vector<8x64xf32>
    %7 = arith.addf %4, %6 : vector<8x64xf32>
    %cst_7 = arith.constant 0.000000e+00 : f32
    %8 = vector.broadcast %cst_7 : f32 to vector<8x64xf32>
    %9 = arith.maximumf %7, %8 : vector<8x64xf32>
    %10 = arith.truncf %9 : vector<8x64xf32> to vector<8x64xbf16>
    %c0_8 = arith.constant 0 : index
    %c0_9 = arith.constant 0 : index
    %11 = vector.load %arg4[%c0_8, %c0_9] : memref<64x32xbf16, #tpu.memory_space<vmem>>, vector<64x32xbf16>
    %cst_10 = arith.constant dense<0.000000e+00> : vector<8x32xf32>
    %12 = tpu.matmul %10, %11, %cst_10 {dimension_numbers = #tpu.dot_dimension_numbers<[1], [0], [0], [1], [0, 0, 1, 1], [], []>} : vector<8x64xbf16>, vector<64x32xbf16>, vector<8x32xf32> -> vector<8x32xf32>
    %c0_11 = arith.constant 0 : index
    %c0_12 = arith.constant 0 : index
    %13 = vector.load %arg5[%c0_11, %c0_12] : memref<1x32xf32, #tpu.memory_space<vmem>>, vector<1x32xf32>
    %14 = vector.broadcast %13 : vector<1x32xf32> to vector<8x32xf32>
    %15 = arith.addf %12, %14 : vector<8x32xf32>
    %16 = arith.addf %15, %0 : vector<8x32xf32>
    %c0_13 = arith.constant 0 : index
    %c0_14 = arith.constant 0 : index
    %17 = vector.load %arg6[%c0_13, %c0_14] : memref<1x32xf32, #tpu.memory_space<vmem>>, vector<1x32xf32>
    %c0_15 = arith.constant 0 : index
    %c0_16 = arith.constant 0 : index
    %18 = vector.load %arg7[%c0_15, %c0_16] : memref<1x32xf32, #tpu.memory_space<vmem>>, vector<1x32xf32>
    %cst_17 = arith.constant dense<0.000000e+00> : vector<8xf32>
    %19 = vector.multi_reduction <add>, %16, %cst_17 [1] : vector<8x32xf32> to vector<8xf32>
    %20 = vector.shape_cast %19 : vector<8xf32> to vector<8x1xf32>
    %cst_18 = arith.constant 3.200000e+01 : f32
    %21 = vector.broadcast %cst_18 : f32 to vector<8x1xf32>
    %22 = arith.divf %20, %21 : vector<8x1xf32>
    %23 = vector.broadcast %22 : vector<8x1xf32> to vector<8x32xf32>
    %24 = arith.subf %16, %23 : vector<8x32xf32>
    %25 = arith.mulf %24, %24 : vector<8x32xf32>
    %cst_19 = arith.constant dense<0.000000e+00> : vector<8xf32>
    %26 = vector.multi_reduction <add>, %25, %cst_19 [1] : vector<8x32xf32> to vector<8xf32>
    %27 = vector.shape_cast %26 : vector<8xf32> to vector<8x1xf32>
    %cst_20 = arith.constant 3.200000e+01 : f32
    %28 = vector.broadcast %cst_20 : f32 to vector<8x1xf32>
    %29 = arith.divf %27, %28 : vector<8x1xf32>
    %cst_21 = arith.constant 9.99999974E-6 : f32
    %30 = vector.broadcast %cst_21 : f32 to vector<8x1xf32>
    %31 = arith.addf %29, %30 : vector<8x1xf32>
    %32 = math.rsqrt %31 : vector<8x1xf32>
    %33 = vector.broadcast %32 : vector<8x1xf32> to vector<8x32xf32>
    %34 = arith.mulf %24, %33 : vector<8x32xf32>
    %35 = vector.broadcast %17 : vector<1x32xf32> to vector<8x32xf32>
    %36 = arith.mulf %34, %35 : vector<8x32xf32>
    %37 = vector.broadcast %18 : vector<1x32xf32> to vector<8x32xf32>
    %38 = arith.addf %36, %37 : vector<8x32xf32>
    %c0_22 = arith.constant 0 : index
    %c0_23 = arith.constant 0 : index
    %39 = vector.load %arg8[%c0_22, %c0_23] : memref<8x32xf32, #tpu.memory_space<vmem>>, vector<8x32xf32>
    tpu.vector_store %arg8[%c0_22, %c0_23], %38 {strides = array<i32>} : memref<8x32xf32, #tpu.memory_space<vmem>>, vector<8x32xf32>,
    return
  }
  func.func @transform_0(%arg0: i32) -> (i32, i32) {
    %c0_i32 = arith.constant 0 : i32
    %c0_i32_0 = arith.constant 0 : i32
    return %arg0, %c0_i32 : i32, i32
  }
  func.func @transform_1(%arg0: i32) -> (i32, i32) {
    %c0_i32 = arith.constant 0 : i32
    %c0_i32_0 = arith.constant 0 : i32
    %c0_i32_1 = arith.constant 0 : i32
    return %c0_i32, %c0_i32_0 : i32, i32
  }
  func.func @transform_2(%arg0: i32) -> (i32, i32) {
    %c0_i32 = arith.constant 0 : i32
    %c0_i32_0 = arith.constant 0 : i32
    %c0_i32_1 = arith.constant 0 : i32
    return %c0_i32, %c0_i32_0 : i32, i32
  }
  func.func @transform_3(%arg0: i32) -> (i32, i32) {
    %c0_i32 = arith.constant 0 : i32
    %c0_i32_0 = arith.constant 0 : i32
    %c0_i32_1 = arith.constant 0 : i32
    return %c0_i32, %c0_i32_0 : i32, i32
  }
  func.func @transform_4(%arg0: i32) -> (i32, i32) {
    %c0_i32 = arith.constant 0 : i32
    %c0_i32_0 = arith.constant 0 : i32
    %c0_i32_1 = arith.constant 0 : i32
    return %c0_i32, %c0_i32_0 : i32, i32
  }
  func.func @transform_5(%arg0: i32) -> (i32, i32) {
    %c0_i32 = arith.constant 0 : i32
    %c0_i32_0 = arith.constant 0 : i32
    %c0_i32_1 = arith.constant 0 : i32
    return %c0_i32, %c0_i32_0 : i32, i32
  }
  func.func @transform_6(%arg0: i32) -> (i32, i32) {
    %c0_i32 = arith.constant 0 : i32
    %c0_i32_0 = arith.constant 0 : i32
    %c0_i32_1 = arith.constant 0 : i32
    return %c0_i32, %c0_i32_0 : i32, i32
  }
  func.func @transform_7(%arg0: i32) -> (i32, i32) {
    %c0_i32 = arith.constant 0 : i32
    %c0_i32_0 = arith.constant 0 : i32
    return %arg0, %c0_i32 : i32, i32
  }
}

</mosaic_0001>

<bundles_post_ra>
// kernel: pwffn_forward.1
= control target key start
LH: loop header
LB: loop body
LE: loop exit
PB: predicated region body
PF: predicated region fallthrough
CT: control target
= control target key end

     0   :  { %12 = vsyncpa [#allocation3], 0  ;;  %s799_s0 = inlined_call_operand.vmem [shape: f32[16,32], index: 0, kind: input, shape index: {}]   ;;  %s800_s1 = inlined_call_operand.vmem [shape: bf16[32,64], index: 1, kind: input, shape index: {}]   ;;  %s801_s2 = inlined_call_operand.vmem [shape: f32[1,64], index: 2, kind: input, shape index: {}]   ;;  %s802_s3 = inlined_call_operand.vmem [shape: bf16[64,32], index: 3, kind: input, shape index: {}]   ;;  %s803_s4 = inlined_call_operand.vmem [shape: f32[1,32], index: 4, kind: input, shape index: {}]   ;;  %s804_s5 = inlined_call_operand.vmem [shape: f32[1,32], index: 5, kind: input, shape index: {}]   ;;  %s805_s6 = inlined_call_operand.vmem [shape: f32[1,32], index: 6, kind: input, shape index: {}]   ;;  %s806_s7 = inlined_call_operand.hbm [shape: f32[16,32], index: 7, kind: output, shape index: {}]  }
   0x1   :  { %14 = vsyncpa [#allocation3 + $0x1], 0  ;;  %s680_s24 = smov 0   ;;  %s682_s25 = smov 0  }
   0x2   :  { %s684_s26 = smov 0   ;;  %s686_s27 = smov 0  }
   0x3 LB: > { %s701_s28 = sadd.s32 4294967295, %s637_s27   ;;  %s485_s29 = sadd.s32 4294967294, %s637_s27   ;;  %s637_s27 = sphi %s686_s27, %s812_s27   ;;  %s633_s26 = sphi %s684_s26, %s811_s26   ;;  %s629_s25 = sphi %s682_s25, %s810_s25   ;;  %s625_s24 = sphi %s680_s24, %s809_s24  }
   0x4   : > { %s705_s30 = sadd.s32 1, %s637_s27   ;;  %s179_s8 = sadd.s32 1, %s633_s26 }
   0x5   : > { %s176_s9 = ssub.s32 %s637_s27, %s705_s30  ;;  %p189_p0 = scmp.ne.s32.totalorder %s633_s26, %s629_s25 }
   0x6   : > { %p177_p1 = scmp.eq.s32.totalorder %s176_s9, 0  ;;  %p190_p2 = scmp.eq.s32.totalorder %s701_s28, 1 }
   0x7   : > { %p195_p3 = scmp.ne.s32.totalorder %s629_s25, %s625_s24  ;;  %p196_p4 = scmp.eq.s32.totalorder %s485_s29, 1 }
   0x8   : > { %s716_s10 = scalar_select %p177_p1, %s633_s26, %s179_s8  }
   0x9   : > { %p718_p5 = por %p190_p2, %p189_p0  ;;  %p722_p6 = por %p196_p4, %p195_p3 }
   0xa   : > { %p488_p7 = scmp.ge.s32.totalorder %s637_s27, 1  ;;  %p239_p8 = scmp.lt.s32.totalorder %s637_s27, 3 }
   0xc   : > { %p240_p9 = pnand %p488_p7, %p239_p8 }
   0xd   : > { %p270_p10 = scmp.lt.s32.totalorder (!%p240_p9), %s701_s28, 1  ;;  %s267_s20 = sand.u32 (!%p240_p9), 1, %s629_s25  }
   0xe   : > { %243 = sbr.rel (%p240_p9) target bundleno = 560 (0x230), region = 48  ;;  %s489_s21 = sshll.u32 (!%p240_p9), %s267_s20, 3 }
   0xf   : > { %s269_s16 = scalar_lea.vmem (!%p240_p9), [#allocation2], %s489_s21  ;;  %s411_s18 = scalar_lea.sflag (!%p240_p9), [#allocation3], %s267_s20 }
  0x10   : > { %s595_s21 = scalar_lea.hbm (!%p240_p9), %s806_s7, 16 }
  0x13   : > { %v522_v0 = vld [vmem:[%s800_s1 + $0x8] sm:$0xff]  ;;  %v526_v1 = vld [vmem:[%s802_s3 + $0x18] sm:$0xff]  ;;  %v521_v2 = vld [vmem:[%s800_s1] sm:$0xff]  ;;  %s271_s19 = scalar_select %p270_p10, %s701_s28, 1  ;;  %vm297_vm0 = vcmask 261120   ;;  %vm352_vm1 = vcmask 523264  }
  0x14   : > { %307 = vmatpush.bf16.msra.mxu0 %v522_v0  ;;  %360 = vmatpush.bf16.msra.mxu1 %v526_v1  ;;  %v525_v3 = vld [vmem:[%s802_s3 + $0x10] sm:$0xff]  ;;  %v524_v6 = vld [vmem:[%s802_s3 + $0x8] sm:$0xff]  ;;  %v523_v7 = vld [vmem:[%s802_s3] sm:$0xff]  ;;  %v639_v20 = vmov 32.0  }
  0x15   : > { %s490_s22 = sshll.u32 %s271_s19, 3  ;;  %v567_v8 = vld [vmem:[%s801_s2] ss:$0 sm:$0xff]  ;;  %571 = vrcp.f32 %v639_v20 }
  0x16   : > { %s273_s8 = scalar_lea.vmem %s799_s0, %s490_s22  ;;  %v568_v14 = vld [vmem:[%s803_s4] ss:$0 sm:$0xff]  ;;  %s518_s22 = sshll.u32 %s701_s28, 3 }
  0x17   : > { %v275_v4 = vld [vmem:[%s273_s8] sm:$0xff]  ;;  %s421_s13 = scalar_lea.hbm %s806_s7, %s518_s22  ;;  %s423_s28 = sshll.u32 %s269_s16, 4  ;;  %s424_s28 = int_to_ptr.vmem [resolvable:$true] %s423_s28 }
  0x18   : > { %308 = vmatpush.bf16.msra.mxu0 %v521_v2  ;;  %361 = vmatpush.bf16.msra.mxu1 %v525_v3  ;;  %v276_v5 = vpack.c.bf16 %v275_v4, %v275_v4  ;;  %v569_v41 = vld [vmem:[%s804_s5] ss:$0 sm:$0xff]  ;;  %s425_s17 = sshll.u32 %s421_s13, 4  ;;  %s426_s17 = int_to_ptr.hbm [resolvable:$true] %s425_s17 }
  0x19   : > { %v570_v44 = vld [vmem:[%s805_s6] ss:$0 sm:$0xff]  ;;  %s589_s19 = sshra.s32 %s426_s17, 4  ;;  %s590_s19 = int_to_ptr.hbm [resolvable:$true] %s589_s19 }
  0x1a   : > { %s591_s22 = scalar_lea.hbm %s590_s19, 8  ;;  %p596_p0 = scmp.lt.s32.totalorder %s590_s19, %s806_s7 }
  0x1b   : > { %499 = vmatmul.msk.bf16.vlgmr.msra.gmra.mxu0 %vm297_vm0, %v276_v5  ;;  %v572_v21 = vpop.eup %571  ;;  %p592_p11 = scmp.ne.s32.totalorder %s590_s19, %s591_s22  ;;  %p597_p1 = scmp.lt.s32.totalorder %s595_s21, %s591_s22 }
  0x1c   : > { %362 = vmatpush.bf16.msra.mxu1 %v524_v6  ;;  %v376_v22 = vmul.f32 32.0, %v572_v21  ;;  %vm380_vm2 = vweird.f32 %v572_v21 }
  0x1d   : > { %p593_p12 = pnand %p592_p11, %p718_p5  ;;  %p598_p2 = por %p597_p1, %p596_p0 }
  0x1e   : > { %v377_v23 = vsub.f32 1.0, %v376_v22 }
  0x1f   : > { %p594_p13 = pneg %p593_p12 }
  0x20   : > { %363 = vmatpush.bf16.msra.mxu1 %v523_v7  ;;  %v378_v24 = vmul.f32 %v572_v21, %v377_v23 }
  0x21   : > { %p599_p3 = pnand %p598_p2, %p594_p13 }
  0x22   : > { %v379_v25 = vadd.f32 %v572_v21, %v378_v24 }
  0x24   : > { %v381_v26 = vsel %vm380_vm2, %v572_v21, %v379_v25 }
  0x98   : > { %v310_v9 = vpop.f32.mrf.mxu0 }
  0x99   : > { %v311_v10 = vadd.f32 %v567_v8, %v310_v9 }
  0x9b   : > { %v314_v11 = vmax.f32 %v311_v10, 0.0 }
  0x9d   : > { %v315_v12 = vpack.c.bf16 %v314_v11, %v314_v11 }
  0x9f   : > { %516 = vmatmul.msk.bf16.vlgmr.msra.gmra.mxu1 %vm352_vm1, %v315_v12 }
  0xa0   : > { %v312_v13 = vpop.f32.mrf.mxu0 }
 0x11c   : > { %v365_v15 = vpop.f32.mrf.mxu1 }
 0x11d   : > { %v366_v16 = vadd.f32 %v568_v14, %v365_v15 }
 0x11f   : > { %v369_v17 = vadd.f32 %v366_v16, %v275_v4 }
 0x121   : > { %v372_v18 = vsel %vm297_vm0, %v369_v17, 0.0 }
 0x122   : > { %373 = vadd.xlane.f32.xlu0 %v372_v18 }
 0x124   : > { %v367_v19 = vpop.f32.mrf.mxu1 }
 0x195   : > { %v374_v27 = vpop.xlane.xlu0 %373 }
 0x196   : > { %v382_v28 = vmul.f32 %v381_v26, %v374_v27 }
 0x198   : > { %v383_v29 = vsub.f32 %v369_v17, %v382_v28 }
 0x19a   : > { %v384_v30 = vmul.f32 %v383_v29, %v383_v29 }
 0x19c   : > { %v385_v31 = vsel %vm297_vm0, %v384_v30, 0.0 }
 0x19d   : > { %386 = vadd.xlane.f32.xlu0 %v385_v31 }
 0x210   : > { %v387_v32 = vpop.xlane.xlu0 %386 }
 0x211   : > { %v388_v33 = vmul.f32 %v387_v32, %v381_v26 }
 0x213   : > { %v389_v34 = vadd.f32 1e-05, %v388_v33 }
 0x215   : > { %573 = vrsqrt.f32 %v389_v34  ;;  %vm396_vm4 = vweird.f32 %v389_v34 }
 0x21b   : > { %v574_v35 = vpop.eup %573 }
 0x21c   : > { %v391_v36 = vmul.f32 %v574_v35, %v389_v34  ;;  %vm397_vm3 = vweird.f32 %v574_v35 }
 0x21d   : > { %vm398_vm5 = vmor %vm396_vm4, %vm397_vm3 }
 0x21e   : > { %v392_v37 = vmul.f32 %v574_v35, %v391_v36 }
 0x220   : > { %v393_v38 = vmul.f32 0.5, %v392_v37 }
 0x222   : > { %v394_v39 = vsub.f32 1.5, %v393_v38 }
 0x224   : > { %v395_v40 = vmul.f32 %v574_v35, %v394_v39 }
 0x226   : > { %v399_v42 = vsel %vm398_vm5, %v574_v35, %v395_v40 }
 0x227   : > { %v400_v43 = vmul.f32 %v399_v42, %v383_v29 }
 0x229   : > { %v404_v45 = vmul.f32 %v569_v41, %v400_v43 }
 0x22b   : > { %v408_v46 = vadd.f32 %v570_v44, %v404_v45 }
 0x22d   : > { %409 = vst.msk [vmem:[%s269_s16] sm:$0xff] %vm297_vm0, %v408_v46 }
 0x22e   : > { %602 = shalt.err (!%p599_p3)
}
 0x22f   : > { %527 = dma.vmem_to_hbm [thread:$0]  (%p718_p5), %s424_s28, 128, %s426_s17, %s411_s18  }
 0x230 PF: > { %p533_p4 = scmp.ge.s32.totalorder %s637_s27, 2  ;;  %s437_s20 = sand.u32 1, %s625_s24  }
 0x231   : > { %s438_s13 = scalar_lea.sflag [#allocation3], %s437_s20 }
 0x232   : > { %p530_p7 = pnand %p533_p4, %p722_p6 }
 0x234   : > { %p531_p8 = pneg %p530_p7 }
 0x236   : > { %620 = dma.done.wait (%p531_p8), %s438_s13, 128  }
 0x237   : > { %622 = vsyncadd (%p531_p8), %s438_s13, 4294967168  ;;  %p17_p9 = scmp.ge.s32.totalorder %s705_s30, 4   ;;  %s809_s24 = smov %s629_s25 }
 0x238   : > { %s810_s25 = smov %s633_s26  ;;  %s811_s26 = smov %s716_s10 }
 0x239   : > { %s812_s27 = smov %s705_s30  ;;  %19 = sbr.rel (!%p17_p9) target bundleno = 3 (0x3), region = 83 }
 0x23e   :  { %444 = vsyncpa [#allocation3], 1 }
 0x23f   :  { %446 = vsyncpa [#allocation3 + $0x1], 1 }

</bundles_post_ra>
